<compile_context>
chip_gen: v7x
topology: tpu7x:2x2x1
jax: 0.10.0
libtpu: 0.0.40
codegen_flags: <defaults>
</compile_context>

<pallas_src>
import functools

import jax
import jax.numpy as jnp
from jax.experimental import pallas as pl
from jax.experimental.pallas import tpu as pltpu

LANE = 128  # TPU vreg lane width


def _round_up(x, m):
    return ((x + m - 1) // m) * m


def dec_kernel(y_ref, w1_ref, w2_ref, w3_ref, b_ref, o_ref, *, d_h1, d_h2, d_out):
    cd = w1_ref.dtype  # matmul operand dtype (bf16 by default, f32 optional)
    # Biases are one folded (1, d_h1+d_h2+d_out) f32 row; static slices.
    b1 = b_ref[:, 0:d_h1]
    b2 = b_ref[:, d_h1:d_h1 + d_h2]
    b3 = b_ref[:, d_h1 + d_h2:d_h1 + d_h2 + d_out]

    # de1 -> bias -> ReLU.  MXU accumulates in f32; bias/ReLU on VPU in f32.
    h1 = jnp.dot(y_ref[...].astype(cd), w1_ref[...],
                 preferred_element_type=jnp.float32)
    h1 = jnp.maximum(h1 + b1, 0.0)
    # Dropout = identity in eval mode.
    # de2 -> bias -> ReLU.  Operand cast to weight dtype (intentional precision
    # choice for the bf16 path); elementwise math stays f32 (v5e-safe).
    h2 = jnp.dot(h1.astype(cd), w2_ref[...], preferred_element_type=jnp.float32)
    h2 = jnp.maximum(h2 + b2, 0.0)
    # de3 -> bias.
    out = jnp.dot(h2.astype(cd), w3_ref[...], preferred_element_type=jnp.float32)
    o_ref[...] = (out + b3).astype(o_ref.dtype)
    # TODO(synk): training-mode dropout (p>0) would need pltpu.prng_seed /
    # pltpu.prng_random_bits + mask/scale; eval-mode forward is implemented.


@functools.partial(jax.jit, static_argnames=("tm", "out_dtype"))
def dec_model_forward(y, padded_params, *, tm=1024, out_dtype=jnp.float32):
    """y: (B, o_dim). padded_params: hidden-dim-padded weights + folded bias."""
    B, o_dim = y.shape
    w1 = padded_params["w1"]          # (o_dim, D_H1)
    w2 = padded_params["w2"]          # (D_H1, D_H2)
    w3 = padded_params["w3"]          # (D_H2, i_shape)
    bias = padded_params["bias"]      # (1, D_H1 + D_H2 + i_shape), f32
    D_H1 = w1.shape[1]
    D_H2, D_OUT = w3.shape
    TOT = bias.shape[1]

    # Batch tile: multiple of 16 rows; small batches take a single full-extent
    # block; B > 32 gets >= 2 grid steps so v7x can use both TensorCores.
    tm16 = max(16, (int(tm) // 16) * 16)
    if B <= 32:
        TM = B                                    # one block, full batch extent
    else:
        TM = min(tm16, _round_up(pl.cdiv(B, 2), 16))
    grid = (pl.cdiv(B, TM),)

    out_itemsize = jnp.dtype(out_dtype).itemsize
    param_bytes = sum(int(a.size) * a.dtype.itemsize for a in (w1, w2, w3, bias))

    # Scheduler hint on the work actually executed (real streamed dims,
    # 128-padded resident hidden dims).
    flops = 2 * B * (o_dim * D_H1 + D_H1 * D_H2 + D_H2 * D_OUT)
    bytes_accessed = (B * o_dim * y.dtype.itemsize + param_bytes
                      + B * D_OUT * out_itemsize)

    # Right-sized VMEM budget: resident params + double-buffered activation
    # tiles + generous slack for f32 intermediates (h1/h2).
    vmem_est = (4 * param_bytes
                + 2 * TM * (o_dim * y.dtype.itemsize + D_OUT * out_itemsize)
                + 4 * TM * (D_H1 + D_H2) * 4)
    vmem_limit = min(32 * 1024 * 1024,
                     max(4 * 1024 * 1024, _round_up(vmem_est, 1 << 20)))

    pinned = lambda i: (0, 0)  # weights/bias stay VMEM-resident across tiles
    kernel = functools.partial(dec_kernel, d_h1=D_H1, d_h2=D_H2, d_out=D_OUT)

    return pl.pallas_call(
        kernel,
        out_shape=jax.ShapeDtypeStruct((B, D_OUT), out_dtype),
        grid=grid,
        in_specs=[
            pl.BlockSpec((TM, o_dim), lambda i: (i, 0)),   # streamed, unpadded
            pl.BlockSpec((o_dim, D_H1), pinned),
            pl.BlockSpec((D_H1, D_H2), pinned),
            pl.BlockSpec((D_H2, D_OUT), pinned),
            pl.BlockSpec((1, TOT), pinned),
        ],
        out_specs=pl.BlockSpec((TM, D_OUT), lambda i: (i, 0)),
        compiler_params=pltpu.CompilerParams(
            dimension_semantics=("parallel",),
            vmem_limit_bytes=vmem_limit),
        cost_estimate=pl.CostEstimate(
            flops=flops, transcendentals=0, bytes_accessed=bytes_accessed),
    )(y, w1, w2, w3, bias)


def make_params(key, i_shape, mid_shape, mid_shape2, o_dim):
    """Deterministic synthetic parameters (nn.Linear weights transposed to (in, out))."""
    ks = jax.random.split(key, 6)
    w1 = jax.random.normal(ks[0], (o_dim, mid_shape), jnp.float32) * 0.1
    b1 = jax.random.normal(ks[1], (1, mid_shape), jnp.float32) * 0.1
    w2 = jax.random.normal(ks[2], (mid_shape, mid_shape2), jnp.float32) * 0.1
    b2 = jax.random.normal(ks[3], (1, mid_shape2), jnp.float32) * 0.1
    w3 = jax.random.normal(ks[4], (mid_shape2, i_shape), jnp.float32) * 0.1
    b3 = jax.random.normal(ks[5], (1, i_shape), jnp.float32) * 0.1
    return dict(w1=w1, b1=b1, w2=w2, b2=b2, w3=w3, b3=b3)


def pad_params(params, *, compute_dtype=jnp.bfloat16):
    """Zero-pad ONLY the resident hidden dims (mid, mid2) to multiples of 128.

    Streamed dims (o_dim rows of w1, i_shape cols of w3) stay unpadded so the
    activation DMAs are not inflated.  Matmul weights are cast to
    `compute_dtype` (bf16 default -- MXU-native on v5e/v6e/v7x); biases stay
    f32 and are folded into one (1, D_H1 + D_H2 + i_shape) row (single DMA).
    Zero padding is numerically identical to the unpadded model.
    """
    def pad2(a, rows, cols, dtype):
        out = jnp.zeros((rows, cols), jnp.float32)
        out = out.at[:a.shape[0], :a.shape[1]].set(a)
        return out.astype(dtype)

    o_dim, mid = params["w1"].shape
    mid2 = params["w2"].shape[1]
    i_shape = params["w3"].shape[1]
    D_H1 = _round_up(mid, LANE)
    D_H2 = _round_up(mid2, LANE)

    bias = jnp.concatenate(
        [pad2(params["b1"], 1, D_H1, jnp.float32),
         pad2(params["b2"], 1, D_H2, jnp.float32),
         params["b3"].astype(jnp.float32)], axis=1)
    return dict(
        w1=pad2(params["w1"], o_dim, D_H1, compute_dtype),
        w2=pad2(params["w2"], D_H1, D_H2, compute_dtype),
        w3=pad2(params["w3"], D_H2, i_shape, compute_dtype),
        bias=bias,
    )


def reference_forward(y, p, compute_dtype=jnp.float32):
    """Pure-JAX reference with matching operand dtype (f32 accumulation)."""
    cd = compute_dtype
    h1 = jnp.dot(y.astype(cd), p["w1"].astype(cd),
                 preferred_element_type=jnp.float32) + p["b1"]
    h1 = jnp.maximum(h1, 0.0)
    h2 = jnp.dot(h1.astype(cd), p["w2"].astype(cd),
                 preferred_element_type=jnp.float32) + p["b2"]
    h2 = jnp.maximum(h2, 0.0)
    return jnp.dot(h2.astype(cd), p["w3"].astype(cd),
                   preferred_element_type=jnp.float32) + p["b3"]


if __name__ == "__main__":
    # dec_model(i_shape=40, mid_shape=32, mid_shape2=24, o_dim=16, p=0.1)
    i_shape, mid_shape, mid_shape2, o_dim = 40, 32, 24, 16
    batch = 8

    key = jax.random.PRNGKey(0)
    k_y, k_p, k_y2 = jax.random.split(key, 3)
    y = jax.random.normal(k_y, (batch, o_dim), jnp.float32)
    params = make_params(k_p, i_shape, mid_shape, mid_shape2, o_dim)

    # bf16 matmul-operand path (default; MXU-native on v5e/v6e/v7x).
    pp_bf16 = pad_params(params, compute_dtype=jnp.bfloat16)
    out_bf16 = jax.block_until_ready(dec_model_forward(y, pp_bf16))
    ref_bf16 = reference_forward(y, params, jnp.bfloat16)
    assert out_bf16.shape == (batch, i_shape)
    assert jnp.allclose(out_bf16, ref_bf16, atol=2e-2, rtol=2e-2)

    # f32 operand path (exact-precision option).
    pp_f32 = pad_params(params, compute_dtype=jnp.float32)
    out_f32 = jax.block_until_ready(dec_model_forward(y, pp_f32))
    ref_f32 = reference_forward(y, params, jnp.float32)
    assert out_f32.shape == (batch, i_shape)
    assert jnp.allclose(out_f32, ref_f32, atol=1e-3, rtol=1e-3)

    # Larger batch: exercises the multi-step grid and the masked tail block
    # (B=200, TM=112 -> grid=(2,), second block partially out of bounds).
    y_big = jax.random.normal(k_y2, (200, o_dim), jnp.float32)
    out_big = jax.block_until_ready(dec_model_forward(y_big, pp_bf16))
    ref_big = reference_forward(y_big, params, jnp.bfloat16)
    assert out_big.shape == (200, i_shape)
    assert jnp.allclose(out_big, ref_big, atol=2e-2, rtol=2e-2)

    print("KERNEL_OK")
</pallas_src>

<mosaic_0001>
module attributes {stable_mosaic.version = 11 : i64} {
  func.func @dec_kernel(%arg0: i32, %arg1: memref<8x16xf32, #tpu.memory_space<vmem>>, %arg2: memref<16x128xbf16, #tpu.memory_space<vmem>>, %arg3: memref<128x128xbf16, #tpu.memory_space<vmem>>, %arg4: memref<128x40xbf16, #tpu.memory_space<vmem>>, %arg5: memref<1x296xf32, #tpu.memory_space<vmem>>, %arg6: memref<8x40xf32, #tpu.memory_space<vmem>>) attributes {dimension_semantics = [#tpu.dimension_semantics<parallel>], iteration_bounds = array<i64: 1>, scalar_prefetch = 0 : i64, scratch_operands = 0 : i64, tpu.core_type = #tpu.core_type<tc>, window_params = [{transform_indices = @transform_0, window_bounds = array<i64: 8, 16>}, {pipeline_mode = #tpu.pipeline_mode<synchronous>, transform_indices = @transform_1, window_bounds = array<i64: 16, 128>}, {pipeline_mode = #tpu.pipeline_mode<synchronous>, transform_indices = @transform_2, window_bounds = array<i64: 128, 128>}, {pipeline_mode = #tpu.pipeline_mode<synchronous>, transform_indices = @transform_3, window_bounds = array<i64: 128, 40>}, {pipeline_mode = #tpu.pipeline_mode<synchronous>, transform_indices = @transform_4, window_bounds = array<i64: 1, 296>}, {transform_indices = @transform_5, window_bounds = array<i64: 8, 40>}]} {
    %c0 = arith.constant 0 : index
    %c0_0 = arith.constant 0 : index
    %0 = vector.load %arg5[%c0, %c0_0] : memref<1x296xf32, #tpu.memory_space<vmem>>, vector<1x128xf32>
    %c0_1 = arith.constant 0 : index
    %c128 = arith.constant 128 : index
    %1 = vector.load %arg5[%c0_1, %c128] : memref<1x296xf32, #tpu.memory_space<vmem>>, vector<1x128xf32>
    %c0_2 = arith.constant 0 : index
    %c256 = arith.constant 256 : index
    %2 = vector.load %arg5[%c0_2, %c256] : memref<1x296xf32, #tpu.memory_space<vmem>>, vector<1x40xf32>
    %c0_3 = arith.constant 0 : index
    %c0_4 = arith.constant 0 : index
    %3 = vector.load %arg1[%c0_3, %c0_4] : memref<8x16xf32, #tpu.memory_space<vmem>>, vector<8x16xf32>
    %4 = arith.truncf %3 : vector<8x16xf32> to vector<8x16xbf16>
    %c0_5 = arith.constant 0 : index
    %c0_6 = arith.constant 0 : index
    %5 = vector.load %arg2[%c0_5, %c0_6] : memref<16x128xbf16, #tpu.memory_space<vmem>>, vector<16x128xbf16>
    %cst = arith.constant dense<0.000000e+00> : vector<8x128xf32>
    %6 = tpu.matmul %4, %5, %cst {dimension_numbers = #tpu.dot_dimension_numbers<[1], [0], [0], [1], [0, 0, 1, 1], [], []>} : vector<8x16xbf16>, vector<16x128xbf16>, vector<8x128xf32> -> vector<8x128xf32>
    %7 = vector.broadcast %0 : vector<1x128xf32> to vector<8x128xf32>
    %8 = arith.addf %6, %7 : vector<8x128xf32>
    %cst_7 = arith.constant 0.000000e+00 : f32
    %9 = vector.broadcast %cst_7 : f32 to vector<8x128xf32>
    %10 = arith.maximumf %8, %9 : vector<8x128xf32>
    %11 = arith.truncf %10 : vector<8x128xf32> to vector<8x128xbf16>
    %c0_8 = arith.constant 0 : index
    %c0_9 = arith.constant 0 : index
    %12 = vector.load %arg3[%c0_8, %c0_9] : memref<128x128xbf16, #tpu.memory_space<vmem>>, vector<128x128xbf16>
    %cst_10 = arith.constant dense<0.000000e+00> : vector<8x128xf32>
    %13 = tpu.matmul %11, %12, %cst_10 {dimension_numbers = #tpu.dot_dimension_numbers<[1], [0], [0], [1], [0, 0, 1, 1], [], []>} : vector<8x128xbf16>, vector<128x128xbf16>, vector<8x128xf32> -> vector<8x128xf32>
    %14 = vector.broadcast %1 : vector<1x128xf32> to vector<8x128xf32>
    %15 = arith.addf %13, %14 : vector<8x128xf32>
    %cst_11 = arith.constant 0.000000e+00 : f32
    %16 = vector.broadcast %cst_11 : f32 to vector<8x128xf32>
    %17 = arith.maximumf %15, %16 : vector<8x128xf32>
    %18 = arith.truncf %17 : vector<8x128xf32> to vector<8x128xbf16>
    %c0_12 = arith.constant 0 : index
    %c0_13 = arith.constant 0 : index
    %19 = vector.load %arg4[%c0_12, %c0_13] : memref<128x40xbf16, #tpu.memory_space<vmem>>, vector<128x40xbf16>
    %cst_14 = arith.constant dense<0.000000e+00> : vector<8x40xf32>
    %20 = tpu.matmul %18, %19, %cst_14 {dimension_numbers = #tpu.dot_dimension_numbers<[1], [0], [0], [1], [0, 0, 1, 1], [], []>} : vector<8x128xbf16>, vector<128x40xbf16>, vector<8x40xf32> -> vector<8x40xf32>
    %21 = vector.broadcast %2 : vector<1x40xf32> to vector<8x40xf32>
    %22 = arith.addf %20, %21 : vector<8x40xf32>
    %c0_15 = arith.constant 0 : index
    %c0_16 = arith.constant 0 : index
    %23 = vector.load %arg6[%c0_15, %c0_16] : memref<8x40xf32, #tpu.memory_space<vmem>>, vector<8x40xf32>
    tpu.vector_store %arg6[%c0_15, %c0_16], %22 {strides = array<i32>} : memref<8x40xf32, #tpu.memory_space<vmem>>, vector<8x40xf32>,
    return
  }
  func.func @transform_0(%arg0: i32) -> (i32, i32) {
    %c0_i32 = arith.constant 0 : i32
    %c0_i32_0 = arith.constant 0 : i32
    return %arg0, %c0_i32 : i32, i32
  }
  func.func @transform_1(%arg0: i32) -> (i32, i32) {
    %c0_i32 = arith.constant 0 : i32
    %c0_i32_0 = arith.constant 0 : i32
    %c0_i32_1 = arith.constant 0 : i32
    return %c0_i32, %c0_i32_0 : i32, i32
  }
  func.func @transform_2(%arg0: i32) -> (i32, i32) {
    %c0_i32 = arith.constant 0 : i32
    %c0_i32_0 = arith.constant 0 : i32
    %c0_i32_1 = arith.constant 0 : i32
    return %c0_i32, %c0_i32_0 : i32, i32
  }
  func.func @transform_3(%arg0: i32) -> (i32, i32) {
    %c0_i32 = arith.constant 0 : i32
    %c0_i32_0 = arith.constant 0 : i32
    %c0_i32_1 = arith.constant 0 : i32
    return %c0_i32, %c0_i32_0 : i32, i32
  }
  func.func @transform_4(%arg0: i32) -> (i32, i32) {
    %c0_i32 = arith.constant 0 : i32
    %c0_i32_0 = arith.constant 0 : i32
    %c0_i32_1 = arith.constant 0 : i32
    return %c0_i32, %c0_i32_0 : i32, i32
  }
  func.func @transform_5(%arg0: i32) -> (i32, i32) {
    %c0_i32 = arith.constant 0 : i32
    %c0_i32_0 = arith.constant 0 : i32
    return %arg0, %c0_i32 : i32, i32
  }
}

</mosaic_0001>

<bundles_post_ra>
// kernel: dec_model_forward.1
= control target key start
LH: loop header
LB: loop body
LE: loop exit
PB: predicated region body
PF: predicated region fallthrough
CT: control target
= control target key end

     0   :  { %v456_v1 = vmov 0.0   ;;  %vm41_vm0 = vcmask 130048   ;;  %vm457_vm1 = vmmov 0   ;;  %s584_s0 = inlined_call_operand.vmem [shape: f32[8,16], index: 0, kind: input, shape index: {}]   ;;  %s585_s1 = inlined_call_operand.vmem [shape: bf16[16,128], index: 1, kind: input, shape index: {}]   ;;  %s586_s2 = inlined_call_operand.vmem [shape: bf16[128,128], index: 2, kind: input, shape index: {}]   ;;  %s587_s3 = inlined_call_operand.vmem [shape: bf16[128,40], index: 3, kind: input, shape index: {}]   ;;  %s588_s4 = inlined_call_operand.vmem [shape: f32[1,296], index: 4, kind: input, shape index: {}]   ;;  %s589_s5 = inlined_call_operand.hbm [shape: f32[8,40], index: 5, kind: output, shape index: {}]  }
   0x1   :  { %v415_v0 = vld [vmem:[%s585_s1] sm:$0xff]   ;;  %366 = vmatprep.subr.bf16.mxu0 %v456_v1  ;;  %372 = vmatprep.subr.bf16.mxu1 %v456_v1  ;;  %v417_v5 = vld [vmem:[%s586_s2 + $0x8] sm:$0xff]   ;;  %v418_v6 = vld [vmem:[%s586_s2 + $0x10] sm:$0xff]  }
   0x2   :  { %v25_v2 = vld [vmem:[%s584_s0] sm:$0xff]  ;;  %367 = vmatpush3.bf16.msra.mxu0 %v415_v0  ;;  %368 = vmatprep.mubr.msk.bf16.mxu0 %vm457_vm1, %v456_v1  ;;  %v419_v7 = vld [vmem:[%s586_s2 + $0x18] sm:$0xff]  }
   0x3   :  { %v416_v3 = vld [vmem:[%s586_s2] sm:$0xff]   ;;  %v26_v4 = vpack.c.bf16 %v25_v2, %v25_v2  ;;  %388 = vmatprep.mubr.msk.bf16.mxu1 %vm457_vm1, %v456_v1  ;;  %392 = vmatprep.subr.bf16.mxu0 %v456_v1 }
   0x4   :  { %373 = vmatpush3.bf16.msra.mxu1 %v416_v3 }
   0x5   :  { %374 = vmatprep.subr.bf16.mxu1 %v456_v1  ;;  %369 = vmatmul.mubr.msk.bf16.vlgmr.msra.gmra.mrb[0].mxu0 %vm41_vm0, %v26_v4 }
   0x6   :  { %408 = vmatprep.mubr.msk.bf16.mxu0 %vm457_vm1, %v456_v1 }
   0x8   :  { %375 = vmatpush3.bf16.msra.mxu1 %v417_v5 }
   0x9   :  { %376 = vmatprep.subr.bf16.mxu1 %v456_v1 }
   0xc   :  { %377 = vmatpush3.bf16.msra.mxu1 %v418_v6 }
   0xd   :  { %378 = vmatprep.subr.bf16.mxu1 %v456_v1 }
   0xe   :  { %10 = vsyncpa [#allocation3], 0  ;;  %v420_v8 = vld [vmem:[%s586_s2 + $0x20] sm:$0xff]   ;;  %v421_v9 = vld [vmem:[%s586_s2 + $0x28] sm:$0xff]   ;;  %s458_s30 = smov [#allocation2]   ;;  %vm309_vm2 = vcmask 326656  }
   0xf   :  { %v422_v10 = vld [vmem:[%s586_s2 + $0x30] sm:$0xff]   ;;  %v423_v11 = vld [vmem:[%s586_s2 + $0x38] sm:$0xff]   ;;  %v424_v12 = vld [vmem:[%s587_s3] sm:$0xff]   ;;  %s317_s6 = sshll.u32 %s458_s30, 4  ;;  %s318_s6 = int_to_ptr.vmem [resolvable:$true] %s317_s6 }
  0x10   :  { %379 = vmatpush3.bf16.msra.mxu1 %v419_v7  ;;  %393 = vmatpush3.bf16.msra.mxu0 %v424_v12  ;;  %v425_v13 = vld [vmem:[%s587_s3 + $0x8] sm:$0xff]   ;;  %v426_v14 = vld [vmem:[%s587_s3 + $0x10] sm:$0xff]   ;;  %v427_v15 = vld [vmem:[%s587_s3 + $0x18] sm:$0xff]   ;;  %p437_p1 = scmp.lt.s32.totalorder %s318_s6, %s318_s6 }
  0x11   :  { %380 = vmatprep.subr.bf16.mxu1 %v456_v1  ;;  %394 = vmatprep.subr.bf16.mxu0 %v456_v1  ;;  %v428_v16 = vld [vmem:[%s587_s3 + $0x20] sm:$0xff]   ;;  %v429_v17 = vld [vmem:[%s587_s3 + $0x28] sm:$0xff]   ;;  %v430_v26 = vld [vmem:[%s587_s3 + $0x30] sm:$0xff]  }
  0x12   :  { %v325_v18 = vld [vmem:[%s588_s4] ss:$0 sm:$0xff]  ;;  %v431_v27 = vld [vmem:[%s587_s3 + $0x38] sm:$0xff]   ;;  %v328_v28 = vld [vmem:[%s588_s4 + $0x1] ss:$0 sm:$0xff]  ;;  %s432_s3 = scalar_lea.vmem %s318_s6, 128 }
  0x13   :  { %v337_v36 = vld [vmem:[%s588_s4 + $0x2] ss:$0 sm:$0xff]  ;;  %p433_p0 = scmp.ne.s32.totalorder %s318_s6, %s432_s3  ;;  %p438_p2 = scmp.lt.s32.totalorder %s432_s3, %s432_s3 }
  0x14   :  { %381 = vmatpush3.bf16.msra.mxu1 %v420_v8  ;;  %395 = vmatpush3.bf16.msra.mxu0 %v425_v13 }
  0x15   :  { %382 = vmatprep.subr.bf16.mxu1 %v456_v1  ;;  %396 = vmatprep.subr.bf16.mxu0 %v456_v1  ;;  %p439_p3 = por %p438_p2, %p437_p1 }
  0x17   :  { %p440_p4 = pnand %p439_p3, %p433_p0 }
  0x18   :  { %383 = vmatpush3.bf16.msra.mxu1 %v421_v9  ;;  %397 = vmatpush3.bf16.msra.mxu0 %v426_v14 }
  0x19   :  { %384 = vmatprep.subr.bf16.mxu1 %v456_v1  ;;  %398 = vmatprep.subr.bf16.mxu0 %v456_v1 }
  0x1c   :  { %385 = vmatpush3.bf16.msra.mxu1 %v422_v10  ;;  %399 = vmatpush3.bf16.msra.mxu0 %v427_v15 }
  0x1d   :  { %386 = vmatprep.subr.bf16.mxu1 %v456_v1  ;;  %400 = vmatprep.subr.bf16.mxu0 %v456_v1 }
  0x20   :  { %387 = vmatpush3.bf16.msra.mxu1 %v423_v11  ;;  %401 = vmatpush3.bf16.msra.mxu0 %v428_v16 }
  0x21   :  { %402 = vmatprep.subr.bf16.mxu0 %v456_v1 }
  0x24   :  { %403 = vmatpush3.bf16.msra.mxu0 %v429_v17 }
  0x25   :  { %404 = vmatprep.subr.bf16.mxu0 %v456_v1 }
  0x28   :  { %405 = vmatpush3.bf16.msra.mxu0 %v430_v26 }
  0x29   :  { %406 = vmatprep.subr.bf16.mxu0 %v456_v1 }
  0x2c   :  { %407 = vmatpush3.bf16.msra.mxu0 %v431_v27 }
  0xd8   :  { %v79_v19 = vpop.f32.mrb[0].mxu0 }
  0xd9   :  { %v80_v20 = vadd.f32 %v325_v18, %v79_v19  ;;  %v370_v21 = vpop.f32.mrb[1].mxu0 }
  0xda   :  { %v82_v22 = vpop.f32.mrb[2].mxu0 }
  0xdb   :  { %v85_v23 = vmax.f32 %v80_v20, 0.0  ;;  %v371_v24 = vpop.f32.mrb[3].mxu0 }
  0xdd   :  { %v86_v25 = vpack.c.bf16 %v85_v23, %v85_v23 }
  0xdf   :  { %389 = vmatmul.mubr.bf16.vlgmr.msra.gmra.mrb[0].mxu1 %v86_v25 }
 0x1b2   :  { %v191_v29 = vpop.f32.mrb[0].mxu1 }
 0x1b3   :  { %v192_v30 = vadd.f32 %v328_v28, %v191_v29  ;;  %v390_v31 = vpop.f32.mrb[1].mxu1 }
 0x1b4   :  { %v194_v32 = vpop.f32.mrb[2].mxu1 }
 0x1b5   :  { %v197_v33 = vmax.f32 %v192_v30, 0.0  ;;  %v391_v34 = vpop.f32.mrb[3].mxu1 }
 0x1b7   :  { %v198_v35 = vpack.c.bf16 %v197_v33, %v197_v33 }
 0x1b9   :  { %409 = vmatmul.mubr.bf16.vlgmr.msra.gmra.mrb[4].mxu0 %v198_v35 }
 0x28c   :  { %v303_v37 = vpop.f32.mrb[4].mxu0 }
 0x28d   :  { %v304_v38 = vadd.f32 %v337_v36, %v303_v37  ;;  %v410_v39 = vpop.f32.mrb[5].mxu0 }
 0x28e   :  { %v306_v40 = vpop.f32.mrb[6].mxu0 }
 0x28f   :  { %v411_v41 = vpop.f32.mrb[7].mxu0  ;;  %310 = vst.msk [vmem:[#allocation2] sm:$0xff] %vm309_vm2, %v304_v38 }
 0x290   :  { %443 = shalt.err (!%p440_p4)
}
 0x291   :  { %s444_s4 = scalar_lea.hbm %s589_s5, 128 }
 0x292   :  { %p445_p5 = scmp.ne.s32.totalorder %s589_s5, %s444_s4  ;;  %p448_p6 = scmp.lt.u32.totalorder %s444_s4, %s589_s5 }
 0x294   :  { %p450_p7 = pnand %p448_p6, %p445_p5 }
 0x296   :  { %453 = shalt.err (!%p450_p7)
}
 0x297   :  { %320 = dma.vmem_to_hbm [thread:$0]  %s318_s6, 128, %s589_s5, [#allocation3]  }
 0x298   :  { %454 = dma.done.wait [#allocation3], 128  }
 0x299   :  { %455 = vsyncadd [#allocation3], 4294967168 }
 0x29a   :  { %324 = vsyncpa [#allocation3], 1 }

</bundles_post_ra>
